<compile_context>
chip_gen: v6e
topology: v6e:2x2x1
jax: 0.10.0
libtpu: 0.0.40
codegen_flags: <defaults>
</compile_context>

<pallas_src>
import math

import jax
import jax.numpy as jnp
from jax.experimental import pallas as pl
from jax.experimental.pallas import tpu as pltpu

# ---------------- problem sizes (consistent with (B,C,H,W) images) ----------
B, C, H, W = 2, 4, 16, 16
D = C * H * W          # 1024  (flattened image, lane-aligned)
HID = 128              # hidden width (lane-aligned)
NUM_CLASSES = 5        # classes 0..3 + null token 4
CF_RATE = 0.2          # default of get_classifier_free_labels (used by forward)

MIN_TB = 8             # one sublane group
BIG_TB = 512           # large-batch tile (memory-roofline sweet spot)


def _batch_tile(b: int) -> int:
    """Batch tile: round b up to a sublane group, cap at BIG_TB.

    Ragged tails are handled by Pallas partial blocks (out-of-bounds rows are
    never stored), so the wrapper never materializes a zero-padded copy.
    """
    return min(BIG_TB, MIN_TB * pl.cdiv(b, MIN_TB))


# ---------------------------- Pallas kernel ---------------------------------
def velocity_kernel(x_ref, cond_ref, w1_ref, w2_ref, b2_ref, o_ref):
    # Hidden layer: (TB, D) @ (D, HID) on MXU (bf16 operands, f32 accumulation),
    # then f32 epilogue: + cond (includes b1 and the label embedding), ReLU.
    h = jnp.dot(x_ref[...], w1_ref[...], preferred_element_type=jnp.float32)
    h = jnp.maximum(h + cond_ref[...].astype(jnp.float32), 0.0)
    # Output layer: (TB, HID) @ (HID, TD) column tile; bf16 MXU operands,
    # f32 accumulation + bias add, bf16 store (halves the output HBM stream).
    v = jnp.dot(h.astype(jnp.bfloat16), w2_ref[...],
                preferred_element_type=jnp.float32)
    o_ref[...] = (v + b2_ref[...]).astype(o_ref.dtype)


def velocity_net(x, cond, w1, w2, b2, *, tb, td):
    b = x.shape[0]
    nb = pl.cdiv(b, tb)       # partial last block handled by Pallas (masked)
    nd = D // td
    return pl.pallas_call(
        velocity_kernel,
        out_shape=jax.ShapeDtypeStruct((b, D), jnp.bfloat16),
        grid=(nb, nd),
        in_specs=[
            pl.BlockSpec((tb, D), lambda i, j: (i, 0)),     # x tile     (bf16)
            pl.BlockSpec((tb, HID), lambda i, j: (i, 0)),   # cond tile  (bf16)
            pl.BlockSpec((D, HID), lambda i, j: (0, 0)),    # w1, VMEM-resident
            pl.BlockSpec((HID, td), lambda i, j: (0, j)),   # w2 column tile
            pl.BlockSpec((1, td), lambda i, j: (0, j)),     # b2 column tile
        ],
        out_specs=pl.BlockSpec((tb, td), lambda i, j: (i, j)),
        compiler_params=pltpu.CompilerParams(
            dimension_semantics=("parallel", "parallel"),   # megacore / 2-TC shard
            vmem_limit_bytes=48 * 1024 * 1024,              # headroom vs v7x 64 MiB
        ),
    )(x, cond, w1, w2, b2)


# ------------------------------ glue / params --------------------------------
def init_params(key):
    ks = jax.random.split(key, 5)
    return {
        "emb": jax.random.normal(ks[0], (NUM_CLASSES, HID), jnp.float32) * 0.02,
        "wt":  jax.random.normal(ks[1], (HID, HID), jnp.float32) / math.sqrt(HID),
        # MXU operands stored in bf16 (halves weight DMA); f32 accumulation in-kernel.
        "w1":  (jax.random.normal(ks[2], (D, HID), jnp.float32)
                / math.sqrt(D)).astype(jnp.bfloat16),
        "b1":  jnp.zeros((1, HID), jnp.float32),
        "w2":  (jax.random.normal(ks[3], (HID, D), jnp.float32)
                / math.sqrt(HID)).astype(jnp.bfloat16),
        "b2":  jnp.zeros((1, D), jnp.float32),
    }


def sinusoidal_time_embedding(t, dim=HID):
    half = dim // 2
    freqs = jnp.exp(-math.log(10000.0) * jnp.arange(half, dtype=jnp.float32) / half)
    args = t.astype(jnp.float32)[:, None] * freqs[None, :]
    return jnp.concatenate([jnp.sin(args), jnp.cos(args)], axis=-1)  # (B, dim)


@jax.jit
def flow_matching_forward(params, x_t, t, labels, rng_key):
    """FlowMatchingNet.forward: classifier-free label drop + velocity net.

    Returns the velocity field in bf16; the ODE-step consumer upcasts if needed.
    """
    b, c, h, w = x_t.shape
    d = c * h * w
    assert d == D, "kernel constants sized for C*H*W == D"

    # get_classifier_free_labels (rate=0.2, null token = 4)
    p_uncond = jax.random.uniform(rng_key, (b,))
    labels = jnp.where(p_uncond < CF_RATE, NUM_CLASSES - 1, labels).astype(jnp.int32)

    # Conditioning (tiny) precomputed in the wrapper; b1 folded in; bf16 stream.
    t_feat = sinusoidal_time_embedding(t)                            # (B, HID) f32
    lab_emb = jnp.take(params["emb"], labels, axis=0)                # (B, HID) f32
    cond = (t_feat @ params["wt"] + lab_emb + params["b1"]).astype(jnp.bfloat16)

    # Flatten + cast activations to bf16.  No zero-pad / slice: ragged batch
    # tails are handled by Pallas partial blocks inside velocity_net.
    x_flat = x_t.reshape(b, d).astype(jnp.bfloat16)

    tb = _batch_tile(b)
    # Guarantee >= 2 grid steps (v7x has 2 TensorCores): if the whole batch fits
    # one tile, split the output D dimension into two 512-wide column tiles.
    nd = 2 if pl.cdiv(b, tb) == 1 else 1
    td = D // nd

    v = velocity_net(x_flat, cond, params["w1"], params["w2"], params["b2"],
                     tb=tb, td=td)
    return v.reshape(b, c, h, w)                                     # bf16


# --------------------------- reference (pure JAX) -----------------------------
def reference_forward(params, x_t, t, labels, rng_key):
    """Same math in plain JAX, mirroring the kernel's bf16 rounding points."""
    b = x_t.shape[0]
    p_uncond = jax.random.uniform(rng_key, (b,))
    labels = jnp.where(p_uncond < CF_RATE, NUM_CLASSES - 1, labels).astype(jnp.int32)
    t_feat = sinusoidal_time_embedding(t)
    lab_emb = jnp.take(params["emb"], labels, axis=0)
    cond = (t_feat @ params["wt"] + lab_emb + params["b1"])
    cond = cond.astype(jnp.bfloat16).astype(jnp.float32)     # mirror cond stream
    x_flat = x_t.reshape(b, D).astype(jnp.bfloat16).astype(jnp.float32)
    w1 = params["w1"].astype(jnp.float32)
    w2 = params["w2"].astype(jnp.float32)
    hid = jnp.maximum(x_flat @ w1 + cond, 0.0)
    hid = hid.astype(jnp.bfloat16).astype(jnp.float32)        # mirror MXU-input cast
    v = (hid @ w2 + params["b2"]).astype(jnp.bfloat16)        # mirror bf16 store
    return v.reshape(b, C, H, W)


if __name__ == "__main__":
    key = jax.random.PRNGKey(0)
    k_param, k_x, k_t, k_lab, k_cf = jax.random.split(key, 5)

    params = init_params(k_param)
    x_t = jax.random.normal(k_x, (B, C, H, W), jnp.float32)
    t = jax.random.uniform(k_t, (B,), jnp.float32)
    labels = jax.random.randint(k_lab, (B,), 0, 4)

    out = jax.block_until_ready(flow_matching_forward(params, x_t, t, labels, k_cf))
    ref = reference_forward(params, x_t, t, labels, k_cf)

    assert out.shape == (B, C, H, W)
    assert out.dtype == jnp.bfloat16
    o32 = out.astype(jnp.float32)
    r32 = ref.astype(jnp.float32)
    err = float(jnp.max(jnp.abs(o32 - r32)))
    # bf16 MXU operands + bf16 output store -> tolerance sized for one bf16 ulp
    # of slack on top of accumulation-order differences.
    assert jnp.allclose(o32, r32, atol=3e-2, rtol=3e-2), f"mismatch vs reference ({err})"

    print("KERNEL_OK")
</pallas_src>

<mosaic_0001>
module attributes {stable_mosaic.version = 11 : i64} {
  func.func @velocity_kernel(%arg0: i32, %arg1: i32, %arg2: memref<8x1024xbf16, #tpu.memory_space<vmem>>, %arg3: memref<8x128xbf16, #tpu.memory_space<vmem>>, %arg4: memref<1024x128xbf16, #tpu.memory_space<vmem>>, %arg5: memref<128x512xbf16, #tpu.memory_space<vmem>>, %arg6: memref<1x512xf32, #tpu.memory_space<vmem>>, %arg7: memref<8x512xbf16, #tpu.memory_space<vmem>>) attributes {dimension_semantics = [#tpu.dimension_semantics<parallel>, #tpu.dimension_semantics<parallel>], iteration_bounds = array<i64: 1, 2>, scalar_prefetch = 0 : i64, scratch_operands = 0 : i64, tpu.core_type = #tpu.core_type<tc>, window_params = [{transform_indices = @transform_0, window_bounds = array<i64: 8, 1024>}, {transform_indices = @transform_1, window_bounds = array<i64: 8, 128>}, {pipeline_mode = #tpu.pipeline_mode<synchronous>, transform_indices = @transform_2, window_bounds = array<i64: 1024, 128>}, {transform_indices = @transform_3, window_bounds = array<i64: 128, 512>}, {transform_indices = @transform_4, window_bounds = array<i64: 1, 512>}, {transform_indices = @transform_5, window_bounds = array<i64: 8, 512>}]} {
    %c0 = arith.constant 0 : index
    %c0_0 = arith.constant 0 : index
    %0 = vector.load %arg2[%c0, %c0_0] : memref<8x1024xbf16, #tpu.memory_space<vmem>>, vector<8x1024xbf16>
    %c0_1 = arith.constant 0 : index
    %c0_2 = arith.constant 0 : index
    %1 = vector.load %arg4[%c0_1, %c0_2] : memref<1024x128xbf16, #tpu.memory_space<vmem>>, vector<1024x128xbf16>
    %cst = arith.constant dense<0.000000e+00> : vector<8x128xf32>
    %2 = tpu.matmul %0, %1, %cst {dimension_numbers = #tpu.dot_dimension_numbers<[1], [0], [0], [1], [0, 0, 1, 1], [], []>} : vector<8x1024xbf16>, vector<1024x128xbf16>, vector<8x128xf32> -> vector<8x128xf32>
    %c0_3 = arith.constant 0 : index
    %c0_4 = arith.constant 0 : index
    %3 = vector.load %arg3[%c0_3, %c0_4] : memref<8x128xbf16, #tpu.memory_space<vmem>>, vector<8x128xbf16>
    %4 = arith.extf %3 : vector<8x128xbf16> to vector<8x128xf32>
    %5 = arith.addf %2, %4 : vector<8x128xf32>
    %cst_5 = arith.constant 0.000000e+00 : f32
    %6 = vector.broadcast %cst_5 : f32 to vector<8x128xf32>
    %7 = arith.maximumf %5, %6 : vector<8x128xf32>
    %8 = arith.truncf %7 : vector<8x128xf32> to vector<8x128xbf16>
    %c0_6 = arith.constant 0 : index
    %c0_7 = arith.constant 0 : index
    %9 = vector.load %arg5[%c0_6, %c0_7] : memref<128x512xbf16, #tpu.memory_space<vmem>>, vector<128x512xbf16>
    %cst_8 = arith.constant dense<0.000000e+00> : vector<8x512xf32>
    %10 = tpu.matmul %8, %9, %cst_8 {dimension_numbers = #tpu.dot_dimension_numbers<[1], [0], [0], [1], [0, 0, 1, 1], [], []>} : vector<8x128xbf16>, vector<128x512xbf16>, vector<8x512xf32> -> vector<8x512xf32>
    %c0_9 = arith.constant 0 : index
    %c0_10 = arith.constant 0 : index
    %11 = vector.load %arg6[%c0_9, %c0_10] : memref<1x512xf32, #tpu.memory_space<vmem>>, vector<1x512xf32>
    %12 = vector.broadcast %11 : vector<1x512xf32> to vector<8x512xf32>
    %13 = arith.addf %10, %12 : vector<8x512xf32>
    %14 = arith.truncf %13 : vector<8x512xf32> to vector<8x512xbf16>
    %c0_11 = arith.constant 0 : index
    %c0_12 = arith.constant 0 : index
    %15 = vector.load %arg7[%c0_11, %c0_12] : memref<8x512xbf16, #tpu.memory_space<vmem>>, vector<8x512xbf16>
    tpu.vector_store %arg7[%c0_11, %c0_12], %14 {strides = array<i32>} : memref<8x512xbf16, #tpu.memory_space<vmem>>, vector<8x512xbf16>,
    return
  }
  func.func @transform_0(%arg0: i32, %arg1: i32) -> (i32, i32) {
    %c0_i32 = arith.constant 0 : i32
    %c0_i32_0 = arith.constant 0 : i32
    return %arg0, %c0_i32 : i32, i32
  }
  func.func @transform_1(%arg0: i32, %arg1: i32) -> (i32, i32) {
    %c0_i32 = arith.constant 0 : i32
    %c0_i32_0 = arith.constant 0 : i32
    return %arg0, %c0_i32 : i32, i32
  }
  func.func @transform_2(%arg0: i32, %arg1: i32) -> (i32, i32) {
    %c0_i32 = arith.constant 0 : i32
    %c0_i32_0 = arith.constant 0 : i32
    %c0_i32_1 = arith.constant 0 : i32
    return %c0_i32, %c0_i32_0 : i32, i32
  }
  func.func @transform_3(%arg0: i32, %arg1: i32) -> (i32, i32) {
    %c0_i32 = arith.constant 0 : i32
    %c0_i32_0 = arith.constant 0 : i32
    return %c0_i32, %arg1 : i32, i32
  }
  func.func @transform_4(%arg0: i32, %arg1: i32) -> (i32, i32) {
    %c0_i32 = arith.constant 0 : i32
    %c0_i32_0 = arith.constant 0 : i32
    return %c0_i32, %arg1 : i32, i32
  }
  func.func @transform_5(%arg0: i32, %arg1: i32) -> (i32, i32) {
    %c0_i32 = arith.constant 0 : i32
    return %arg0, %arg1 : i32, i32
  }
}

</mosaic_0001>

<bundles_post_ra>
// kernel: flow_matching_forward.1
= control target key start
LH: loop header
LB: loop body
LE: loop exit
PB: predicated region body
PF: predicated region fallthrough
CT: control target
= control target key end

     0   :  { %s2533_s0 = inlined_call_operand.vmem [shape: bf16[2,1024], index: 0, kind: input, shape index: {}]   ;;  %s2534_s1 = inlined_call_operand.vmem [shape: bf16[2,128], index: 1, kind: input, shape index: {}]   ;;  %s2535_s2 = inlined_call_operand.hbm [shape: bf16[1024,128], index: 2, kind: input, shape index: {}]   ;;  %s2536_s3 = inlined_call_operand.hbm [shape: bf16[128,1024], index: 3, kind: input, shape index: {}]   ;;  %s2537_s4 = inlined_call_operand.vmem [shape: f32[1,1024], index: 4, kind: input, shape index: {}]   ;;  %s2538_s5 = inlined_call_operand.vmem [shape: bf16[2,1024], index: 5, kind: output, shape index: {}]  }
   0x1   :  { %2544 = sst [smem:[#allocation11_spill]] %s2538_s5 }
   0x2   :  { %10 = vsyncpa [#allocation3], 0 }
   0x3   :  { %11 = vsyncpa [#allocation5], 0 }
   0x4   :  { %13 = vsyncpa [#allocation5 + $0x1], 0  ;;  %s2302_s18 = smov 0   ;;  %s2304_s19 = smov 0  }
   0x5   :  { %s2306_s20 = smov 0   ;;  %s2308_s21 = smov 0  }
   0x6   :  { %s2310_s22 = smov 0   ;;  %s2312_s23 = smov 0  }
   0x7 LB: > { %2545 = sst [smem:[#allocation9_spill]] %s2256_s23  ;;  %s1698_s24 = sadd.s32 4294967295, %s2256_s23   ;;  %s2256_s23 = sphi %s2312_s23, %s19_s23   ;;  %s2252_s22 = sphi %s2310_s22, %s2564_s22   ;;  %s2248_s21 = sphi %s2308_s21, %s2563_s21   ;;  %s2244_s20 = sphi %s2306_s20, %s2562_s20   ;;  %s2240_s19 = sphi %s2304_s19, %s2561_s19   ;;  %s2236_s18 = sphi %s2302_s18, %s2560_s18  }
   0x8   : > { %p118_p0 = scmp.ne.s32.totalorder %s2244_s20, %s2240_s19  ;;  %p119_p1 = scmp.eq.s32.totalorder %s2256_s23, 0 }
   0x9   : > { %p124_p2 = scmp.ne.s32.totalorder %s2240_s19, %s2236_s18  ;;  %p2335_p3 = scmp.eq.s32.totalorder %s1698_s24, 0 }
   0xa   : > { %p176_p4 = scmp.eq.s32.totalorder %s1698_s24, 1  ;;  %p120_p5 = por %p119_p1, %p118_p0 }
   0xb   : > { %s2546_s25 = scalar_select %p2335_p3, 1, 0 }
   0xc   : > { %p1700_p6 = scmp.ge.s32.totalorder %s2256_s23, 1  ;;  %p2342_p7 = por %p2335_p3, %p124_p2 }
   0xd   : > { %p2346_p8 = por %p176_p4, %p118_p0  ;;  %p189_p9 = scmp.lt.s32.totalorder %s2256_s23, 3 }
   0xe   : > { %s2547_s26 = scalar_select %p2342_p7, 1, 0 }
   0xf   : > { %s2548_s27 = scalar_select %p2346_p8, 1, 0 }
  0x10   : > { %p2351_p10 = pnand %p1700_p6, %p189_p9  ;;  %s2262_s29 = smov [#allocation2]  }
  0x11   : > { %2549 = sst [smem:[#allocation10_spill]] %s2548_s27  ;;  %s228_s30 = sshll.u32 %s2262_s29, 4  ;;  %s229_s30 = int_to_ptr.vmem [resolvable:$true] %s228_s30 }
  0x12   : > { %p1914_p11 = pneg %p2351_p10  ;;  %p1923_p12 = scmp.lt.s32.totalorder %s2256_s23, 2 }
  0x13   : > { %s28_s8 = sadd.s32 1, %s2252_s22  ;;  %s2143_s10 = scalar_lea.vmem %s229_s30, 8192 }
  0x14   : > { %p2360_p13 = pnand %p1914_p11, %p2335_p3  ;;  %p2364_p0 = pnand %p1923_p12, %p120_p5 }
  0x15   : > { %p2369_p1 = scmp.ge.s32.totalorder %s28_s8, 2  ;;  %p2144_p4 = scmp.ne.s32.totalorder %s229_s30, %s2143_s10 }
  0x16   : > { %p2134_p2 = pneg %p2360_p13  ;;  %p2151_p11 = scmp.lt.s32.totalorder %s229_s30, %s229_s30 }
  0x17   : > { %p2152_p8 = scmp.lt.s32.totalorder %s2143_s10, %s2143_s10 }
  0x18   : > { %p2146_p6 = pnand %p2144_p4, %p2134_p2 }
  0x19   : > { %p2153_p7 = por %p2152_p8, %p2151_p11 }
  0x1a   : > { %p2147_p9 = pneg %p2146_p6 }
  0x1c   : > { %p2154_p3 = pnand %p2153_p7, %p2147_p9 }
  0x1e   : > { %2157 = shalt.err (!%p2154_p3)
}
  0x1f   : > { %s2263_s11 = smov 64   ;;  %s2264_s12 = smov 4  }
  0x20   : > { %1917 = dma.hbm_to_vmem [thread:$0]  (!%p2360_p13), %s2535_s2, 8192, %s229_s30, [#allocation3], %s2263_s11, %s2263_s11, %s2264_s12  }
  0x21   : > { %s111_s15 = sadd.s32 1, %s2244_s20  ;;  %s2566_s8 = smov (%p2369_p1, %s28_s8), 0 }
  0x22   : > { %s242_s16 = sand.u32 1, %s2244_s20   ;;  %s1819_s17 = sshll.u32 %s2252_s22, 8 }
  0x23   : > { %s108_s18 = ssub.s32 %s2252_s22, %s2566_s8  ;;  %s1705_s24 = sshll.u32 %s242_s16, 8 }
  0x24   : > { %p109_p3 = scmp.eq.s32.totalorder %s108_s18, 0  ;;  %s252_s23 = scalar_lea.hbm %s2536_s3, %s1819_s17 }
  0x25   : > { %s246_s6 = scalar_lea.vmem [#allocation4], %s1705_s24  ;;  %s243_s30 = scalar_lea.sflag [#allocation5], %s242_s16 }
  0x26   : > { %s2393_s5 = scalar_select %p109_p3, %s2244_s20, %s111_s15  }
  0x27   : > { %s253_s27 = sshll.u32 %s246_s6, 4  ;;  %p2160_p5 = pneg %p2364_p0  ;;  %s254_s27 = int_to_ptr.vmem [resolvable:$true] %s253_s27 }
  0x28   : > { %s2171_s9 = scalar_lea.vmem %s254_s27, 4096  ;;  %s2265_s11 = smov [#allocation4]  }
  0x29   : > { %p2172_p7 = scmp.ne.s32.totalorder %s254_s27, %s2171_s9  ;;  %s2176_s12 = sshll.u32 %s2265_s11, 4  ;;  %s2177_s12 = int_to_ptr.vmem [resolvable:$false] %s2176_s12 }
  0x2a   : > { %s2178_s13 = scalar_lea.vmem %s2177_s12, 8192  ;;  %p2179_p13 = scmp.lt.s32.totalorder %s254_s27, %s2177_s12 }
  0x2b   : > { %p2174_p8 = pnand %p2172_p7, %p2160_p5  ;;  %p2180_p1 = scmp.lt.s32.totalorder %s2178_s13, %s2171_s9 }
  0x2d   : > { %p2175_p12 = pneg %p2174_p8  ;;  %p2181_p2 = por %p2180_p1, %p2179_p13 }
  0x2f   : > { %p2182_p4 = pnand %p2181_p2, %p2175_p12 }
  0x31   : > { %2185 = shalt.err (!%p2182_p4)
}
  0x32   : > { %s2266_s14 = smov 512   ;;  %s2267_s15 = smov 256  }
  0x33   : > { %s2268_s17 = smov 16   ;;  %273 = sbr.rel (%p2351_p10) target bundleno = 544 (0x220), region = 40 }
  0x34   : > { %1921 = dma.hbm_to_vmem [thread:$0]  (!%p2364_p0), %s252_s23, 4096, %s254_s27, %s243_s30, %s2266_s14, %s2267_s15, %s2268_s17  }
  0x35   : > { %p2554_p6 = scmp.ne.s32.totalorder (!%p2351_p10), %s2546_s25, 0 }
  0x38   : > { %2227 = dma.done.wait (%p2554_p6), [#allocation3], 8192  }
  0x39   : > { %2229 = vsyncadd (%p2554_p6), [#allocation3], 4294959104  ;;  %s2406_s16 = sand.u32 1, %s2240_s19   ;;  %p2555_p0 = scmp.ne.s32.totalorder %s2547_s26, 0 }
  0x3a   : > { %s1710_s18 = sshll.u32 %s2406_s16, 8  ;;  %s280_s24 = scalar_lea.sflag [#allocation5], %s2406_s16 }
  0x3b   : > { %s2410_s29 = scalar_lea.vmem [#allocation4], %s1710_s18 }
  0x3c   : > { %2231 = dma.done.wait (%p2555_p0), %s280_s24, 4096  }
  0x3d   : > { %2233 = vsyncadd (%p2555_p0), %s280_s24, 4294963200  ;;  %v2014_v0 = vld [vmem:[#allocation2 + $0x78] sm:$0xff]   ;;  %v2018_v4 = vld [vmem:[#allocation2 + $0x70] sm:$0xff]   ;;  %v2269_v24 = vmov 1966171168   ;;  %v511_v26 = vlaneseq  ;;  %s2495_s18 = sshll.u32 %s2248_s21, 2 }
  0x3e   : > { %v2015_v1 = vld [vmem:[#allocation2 + $0xf8] sm:$0xff]   ;;  %1820 = vmatprep.subr.bf16.mxu0 %v2014_v0  ;;  %v2019_v5 = vld [vmem:[#allocation2 + $0xf0] sm:$0xff]   ;;  %v2022_v8 = vld [vmem:[#allocation2 + $0x68] sm:$0xff]   ;;  %v509_v25 = vunpack.c.l.s4 %v2269_v24  ;;  %p350_p10 = scmp.lt.s32.totalorder %s2495_s18, 7  ;;  %s1711_s21 = sshll.u32 %s2406_s16, 4 }
  0x3f   : > { %v2016_v2 = vld [vmem:[#allocation2 + $0x38] sm:$0xff]   ;;  %1842 = vmatprep.subr.bf16.mxu1 %v2015_v1  ;;  %v2020_v6 = vld [vmem:[#allocation2 + $0x30] sm:$0xff]   ;;  %v2023_v9 = vld [vmem:[#allocation2 + $0xe8] sm:$0xff]   ;;  %v2416_v32 = vshrl.u32 %v511_v26, 7  ;;  %s326_s26 = scalar_lea.vmem [#allocation6], %s1711_s21   ;;  %s2556_s27 = sld [smem:[#allocation10_spill]] }
  0x40   : > { %v2017_v3 = vld [vmem:[#allocation2 + $0xb8] sm:$0xff]   ;;  %1821 = vmatpush3.bf16.msra.mxu0 %v2016_v2  ;;  %v2021_v7 = vld [vmem:[#allocation2 + $0xb0] sm:$0xff]   ;;  %v2024_v10 = vld [vmem:[#allocation2 + $0x28] sm:$0xff]   ;;  %v510_v31 = vunpack.c.0.s8 %v509_v25  ;;  %s351_s24 = scalar_select %p350_p10, %s2495_s18, 7 }
  0x41   : > { %1843 = vmatpush3.bf16.msra.mxu1 %v2017_v3  ;;  %1822 = vmatprep.subr.bf16.mxu0 %v2018_v4  ;;  %v2025_v11 = vld [vmem:[#allocation2 + $0xa8] sm:$0xff]   ;;  %v2026_v12 = vld [vmem:[#allocation2 + $0x60] sm:$0xff]   ;;  %v2030_v16 = vld [vmem:[#allocation2 + $0x58] sm:$0xff]  }
  0x42   : > { %1844 = vmatprep.subr.bf16.mxu1 %v2019_v5  ;;  %v2027_v13 = vld [vmem:[#allocation2 + $0xe0] sm:$0xff]   ;;  %v2031_v17 = vld [vmem:[#allocation2 + $0xd8] sm:$0xff]   ;;  %v2034_v20 = vld [vmem:[#allocation2 + $0x50] sm:$0xff]   ;;  %v2419_v37 = vsub.s32 %v510_v31, %v2416_v32  ;;  %s352_s25 = scalar_lea.vmem %s2537_s4, %s351_s24 }
  0x43   : > { %v2028_v14 = vld [vmem:[#allocation2 + $0x20] sm:$0xff]   ;;  %v2032_v18 = vld [vmem:[#allocation2 + $0x18] sm:$0xff]   ;;  %v2035_v21 = vld [vmem:[#allocation2 + $0xd0] sm:$0xff]  }
  0x44   : > { %1823 = vmatpush3.bf16.msra.mxu0 %v2020_v6  ;;  %v2029_v15 = vld [vmem:[#allocation2 + $0xa0] sm:$0xff]   ;;  %v2033_v19 = vld [vmem:[#allocation2 + $0x98] sm:$0xff]   ;;  %v2036_v22 = vld [vmem:[#allocation2 + $0x10] sm:$0xff]  }
  0x45   : > { %1845 = vmatpush3.bf16.msra.mxu1 %v2021_v7  ;;  %1824 = vmatprep.subr.bf16.mxu0 %v2022_v8  ;;  %v2037_v23 = vld [vmem:[#allocation2 + $0x90] sm:$0xff]   ;;  %v2038_v27 = vld [vmem:[#allocation2 + $0x48] sm:$0xff]   ;;  %v2042_v33 = vld [vmem:[#allocation2 + $0x40] sm:$0xff]   ;;  %p2557_p9 = scmp.ne.s32.totalorder %s2556_s27, 0 }
  0x46   : > { %1846 = vmatprep.subr.bf16.mxu1 %v2023_v9  ;;  %v2039_v28 = vld [vmem:[#allocation2 + $0xc8] sm:$0xff]   ;;  %v2043_v34 = vld [vmem:[#allocation2 + $0xc0] sm:$0xff]   ;;  %v2049_v40 = vld [vmem:[%s2533_s0 + $0x10] ss:$8 sps:$4 sm:$0xff]   ;;  %s2558_s10 = sld [smem:[#allocation11_spill]] (%p2557_p9)  ;;  %s2258_s30 = smov (%p2557_p9), 0  }
  0x47   : > { %v2040_v29 = vld [vmem:[#allocation2 + $0x8] sm:$0xff]   ;;  %v2044_v35 = vld [vmem:[#allocation2] sm:$0xff]   ;;  %v2051_v41 = vld [vmem:[%s2533_s0 + $0x14] ss:$8 sps:$4 sm:$0xff]   ;;  %v528_v45 = vrot.slane %v2049_v40, %v2419_v37 }
  0x48   : > { %1825 = vmatpush3.bf16.msra.mxu0 %v2024_v10  ;;  %v2041_v30 = vld [vmem:[#allocation2 + $0x88] sm:$0xff]   ;;  %v2045_v36 = vld [vmem:[#allocation2 + $0x80] sm:$0xff]   ;;  %v2052_v43 = vld [vmem:[#allocation2 + $0x178] sm:$0xff]   ;;  %v2439_v47 = vrot.slane %v2051_v41, %v2419_v37 }
  0x49   : > { %1847 = vmatpush3.bf16.msra.mxu1 %v2025_v11  ;;  %1826 = vmatprep.subr.bf16.mxu0 %v2026_v12  ;;  %v2046_v38 = vld [vmem:[%s2533_s0] ss:$8 sps:$4 sm:$0xff]   ;;  %v2048_v39 = vld [vmem:[%s2533_s0 + $0x4] ss:$8 sps:$4 sm:$0xff]   ;;  %v2053_v46 = vld [vmem:[#allocation2 + $0x1f8] sm:$0xff]  }
  0x4a   : > { %1848 = vmatprep.subr.bf16.mxu1 %v2027_v13  ;;  %v514_v42 = vrot.slane %v2046_v38, %v2419_v37  ;;  %v2435_v44 = vrot.slane %v2048_v39, %v2419_v37  ;;  %v2054_v51 = vld [vmem:[#allocation2 + $0x138] sm:$0xff]   ;;  %v2056_v56 = vld [vmem:[#allocation2 + $0x170] sm:$0xff]   ;;  %v2060_v63 = vld [vmem:[#allocation2 + $0x168] sm:$0xff]  }
  0x4b   : > { %v2055_v54 = vld [vmem:[#allocation2 + $0x1b8] sm:$0xff]   ;;  %v2057_v59 = vld [vmem:[#allocation2 + $0x1f0] sm:$0xff]   ;;  %v2061_v0 = vld [vmem:[#allocation2 + $0x1e8] sm:$0xff]  }
  0x4c   : > { %1827 = vmatpush3.bf16.msra.mxu0 %v2028_v14  ;;  %v537_v48 = vcombine.high %v514_v42, %v528_v45  ;;  %v536_v49 = vcombine.low %v514_v42, %v528_v45  ;;  %v539_v50 = vcombine.high %v2435_v44, %v2439_v47  ;;  %v2058_v60 = vld [vmem:[#allocation2 + $0x130] sm:$0xff]   ;;  %v2062_v1 = vld [vmem:[#allocation2 + $0x128] sm:$0xff]   ;;  %v2064_v3 = vld [vmem:[#allocation2 + $0x160] sm:$0xff]   ;;  %s1509_s6 = scalar_lea.vmem (%p2557_p9), %s2558_s10, %s2495_s18  }
  0x4d   : > { %1849 = vmatpush3.bf16.msra.mxu1 %v2029_v15  ;;  %1828 = vmatprep.subr.bf16.mxu0 %v2030_v16  ;;  %v2059_v62 = vld [vmem:[#allocation2 + $0x1b0] sm:$0xff]   ;;  %v2063_v2 = vld [vmem:[#allocation2 + $0x1a8] sm:$0xff]   ;;  %v2065_v4 = vld [vmem:[#allocation2 + $0x1e0] sm:$0xff]  }
  0x4e   : > { %1850 = vmatprep.subr.bf16.mxu1 %v2031_v17  ;;  %v560_v52 = vrot.slane %v537_v48, %v2419_v37  ;;  %v546_v53 = vrot.slane %v536_v49, %v2419_v37  ;;  %v567_v55 = vrot.slane %v539_v50, %v2419_v37  ;;  %v2066_v5 = vld [vmem:[#allocation2 + $0x120] sm:$0xff]   ;;  %v2068_v7 = vld [vmem:[#allocation2 + $0x158] sm:$0xff]   ;;  %v2072_v11 = vld [vmem:[#allocation2 + $0x150] sm:$0xff]  }
  0x4f   : > { %v2067_v6 = vld [vmem:[#allocation2 + $0x1a0] sm:$0xff]   ;;  %v2069_v8 = vld [vmem:[#allocation2 + $0x1d8] sm:$0xff]   ;;  %v2073_v12 = vld [vmem:[#allocation2 + $0x1d0] sm:$0xff]  }
  0x50   : > { %1829 = vmatpush3.bf16.msra.mxu0 %v2032_v18  ;;  %1018 = vmatprep.mubr.bf16.mxu0 %v560_v52  ;;  %v570_v57 = vcombine.high %v560_v52, %v560_v52  ;;  %v568_v58 = vcombine.high %v546_v53, %v546_v53  ;;  %v571_v61 = vcombine.high %v567_v55, %v567_v55  ;;  %v2070_v9 = vld [vmem:[#allocation2 + $0x118] sm:$0xff]   ;;  %v2074_v13 = vld [vmem:[#allocation2 + $0x110] sm:$0xff]   ;;  %v2076_v15 = vld [vmem:[#allocation2 + $0x148] sm:$0xff]  }
  0x51   : > { %1851 = vmatpush3.bf16.msra.mxu1 %v2033_v19  ;;  %1830 = vmatprep.subr.bf16.mxu0 %v2034_v20  ;;  %v2071_v10 = vld [vmem:[#allocation2 + $0x198] sm:$0xff]   ;;  %v2075_v14 = vld [vmem:[#allocation2 + $0x190] sm:$0xff]   ;;  %v2077_v16 = vld [vmem:[#allocation2 + $0x1c8] sm:$0xff]  }
  0x52   : > { %1852 = vmatprep.subr.bf16.mxu1 %v2035_v21  ;;  %1058 = vmatprep.mubr.bf16.mxu1 %v570_v57  ;;  %v2078_v17 = vld [vmem:[#allocation2 + $0x108] sm:$0xff]   ;;  %v2080_v19 = vld [vmem:[#allocation2 + $0x140] sm:$0xff]   ;;  %v538_v21 = vcombine.low %v2435_v44, %v2439_v47 }
  0x53   : > { %v2079_v18 = vld [vmem:[#allocation2 + $0x188] sm:$0xff]   ;;  %v2081_v20 = vld [vmem:[#allocation2 + $0x1c0] sm:$0xff]  }
  0x54   : > { %1831 = vmatpush3.bf16.msra.mxu0 %v2036_v22  ;;  %v2082_v22 = vld [vmem:[#allocation2 + $0x100] sm:$0xff]   ;;  %v553_v24 = vrot.slane %v538_v21, %v2419_v37  ;;  %v2095_v31 = vld [vmem:[%s2410_s29 + $0xcc] ss:$16 sps:$4 sm:$0xff]   ;;  %v2099_v39 = vld [vmem:[%s2410_s29 + $0xa8] ss:$16 sps:$4 sm:$0xff]  }
  0x55   : > { %1853 = vmatpush3.bf16.msra.mxu1 %v2037_v23  ;;  %1832 = vmatprep.subr.bf16.mxu0 %v2038_v27  ;;  %v2083_v23 = vld [vmem:[#allocation2 + $0x180] sm:$0xff]   ;;  %v2107_v41 = vld [vmem:[%s2410_s29 + $0x8c] ss:$16 sps:$4 sm:$0xff]   ;;  %v2111_v47 = vld [vmem:[%s2410_s29 + $0x68] ss:$16 sps:$4 sm:$0xff]  }
  0x56   : > { %1854 = vmatprep.subr.bf16.mxu1 %v2039_v28  ;;  %v569_v25 = vcombine.high %v553_v24, %v553_v24  ;;  %v2084_v26 = vld [vmem:[%s2410_s29 + $0xe0] ss:$16 sps:$4 sm:$0xff]   ;;  %v2086_v27 = vld [vmem:[%s2410_s29 + $0xe4] ss:$16 sps:$4 sm:$0xff]   ;;  %v2087_v28 = vld [vmem:[%s2410_s29 + $0xe8] ss:$16 sps:$4 sm:$0xff]  }
  0x57   : > { %v2096_v38 = vld [vmem:[%s2410_s29 + $0xa0] ss:$16 sps:$4 sm:$0xff]   ;;  %v2104_v40 = vld [vmem:[%s2410_s29 + $0x84] ss:$16 sps:$4 sm:$0xff]   ;;  %v2113_v45 = vld [vmem:[%s2410_s29 + $0x6c] ss:$16 sps:$4 sm:$0xff]  }
  0x58   : > { %1833 = vmatpush3.bf16.msra.mxu0 %v2040_v29  ;;  %v2089_v29 = vld [vmem:[%s2410_s29 + $0xec] ss:$16 sps:$4 sm:$0xff]   ;;  %v2102_v42 = vld [vmem:[%s2410_s29 + $0x80] ss:$16 sps:$4 sm:$0xff]   ;;  %v2110_v44 = vld [vmem:[%s2410_s29 + $0x64] ss:$16 sps:$4 sm:$0xff]  }
  0x59   : > { %1855 = vmatpush3.bf16.msra.mxu1 %v2041_v30  ;;  %1834 = vmatprep.subr.bf16.mxu0 %v2042_v33  ;;  %v2092_v30 = vld [vmem:[%s2410_s29 + $0xc4] ss:$16 sps:$4 sm:$0xff]   ;;  %v2090_v33 = vld [vmem:[%s2410_s29 + $0xc0] ss:$16 sps:$4 sm:$0xff]   ;;  %v2119_v49 = vld [vmem:[%s2410_s29 + $0x4c] ss:$16 sps:$4 sm:$0xff]  }
  0x5a   : > { %1856 = vmatprep.subr.bf16.mxu1 %v2043_v34  ;;  %v2093_v34 = vld [vmem:[%s2410_s29 + $0xc8] ss:$16 sps:$4 sm:$0xff]   ;;  %v2116_v48 = vld [vmem:[%s2410_s29 + $0x44] ss:$16 sps:$4 sm:$0xff]   ;;  %v2114_v50 = vld [vmem:[%s2410_s29 + $0x40] ss:$16 sps:$4 sm:$0xff]  }
  0x5b   : > { %v2122_v52 = vld [vmem:[%s2410_s29 + $0x24] ss:$16 sps:$4 sm:$0xff]   ;;  %v2131_v57 = vld [vmem:[%s2410_s29 + $0xc] ss:$16 sps:$4 sm:$0xff]  }
  0x5c   : > { %1835 = vmatpush3.bf16.msra.mxu0 %v2044_v35  ;;  %v2098_v35 = vld [vmem:[%s2410_s29 + $0xa4] ss:$16 sps:$4 sm:$0xff]  }
  0x5d   : > { %1857 = vmatpush3.bf16.msra.mxu1 %v2045_v36  ;;  %1864 = vmatprep.subr.bf16.mxu0 %v2052_v43  ;;  %v2101_v36 = vld [vmem:[%s2410_s29 + $0xac] ss:$16 sps:$4 sm:$0xff]   ;;  %v2105_v43 = vld [vmem:[%s2410_s29 + $0x88] ss:$16 sps:$4 sm:$0xff]  }
  0x5e   : > { %1886 = vmatprep.subr.bf16.mxu1 %v2053_v46  ;;  %v2108_v46 = vld [vmem:[%s2410_s29 + $0x60] ss:$16 sps:$4 sm:$0xff]  }
  0x5f   : > { %1019 = vmatmul.mubr.bf16.vlgmr.msra.gmra.mxu0 %v546_v53  ;;  %v2125_v53 = vld [vmem:[%s2410_s29 + $0x2c] ss:$16 sps:$4 sm:$0xff]  }
  0x60   : > { %1865 = vmatpush3.bf16.msra.mxu0 %v2054_v51  ;;  %1059 = vmatmul.mubr.bf16.vlgmr.msra.gmra.mxu1 %v568_v58  ;;  %v2117_v51 = vld [vmem:[%s2410_s29 + $0x48] ss:$16 sps:$4 sm:$0xff]   ;;  %v2126_v58 = vld [vmem:[%s2410_s29] ss:$16 sps:$4 sm:$0xff]  }
  0x61   : > { %1866 = vmatprep.subr.bf16.mxu0 %v2056_v56  ;;  %1887 = vmatpush3.bf16.msra.mxu1 %v2055_v54  ;;  %v2120_v54 = vld [vmem:[%s2410_s29 + $0x20] ss:$16 sps:$4 sm:$0xff]   ;;  %v2128_v56 = vld [vmem:[%s2410_s29 + $0x4] ss:$16 sps:$4 sm:$0xff]  }
  0x62   : > { %1098 = vmatprep.mubr.bf16.mxu0 %v567_v55  ;;  %1888 = vmatprep.subr.bf16.mxu1 %v2057_v59  ;;  %v2123_v55 = vld [vmem:[%s2410_s29 + $0x28] ss:$16 sps:$4 sm:$0xff]  }
  0x63   : > { %1138 = vmatprep.mubr.bf16.mxu1 %v571_v61  ;;  %v2129_v59 = vld [vmem:[%s2410_s29 + $0x8] ss:$16 sps:$4 sm:$0xff]  }
  0x64   : > { %1867 = vmatpush3.bf16.msra.mxu0 %v2058_v60  ;;  %v2270_v60 = vmov 0  }
  0x65   : > { %1868 = vmatprep.subr.bf16.mxu0 %v2060_v63  ;;  %1889 = vmatpush3.bf16.msra.mxu1 %v2059_v62 }
  0x66   : > { %1890 = vmatprep.subr.bf16.mxu1 %v2061_v0 }
  0x68   : > { %1869 = vmatpush3.bf16.msra.mxu0 %v2062_v1 }
  0x69   : > { %1870 = vmatprep.subr.bf16.mxu0 %v2064_v3  ;;  %1891 = vmatpush3.bf16.msra.mxu1 %v2063_v2 }
  0x6a   : > { %1892 = vmatprep.subr.bf16.mxu1 %v2065_v4 }
  0x6c   : > { %1871 = vmatpush3.bf16.msra.mxu0 %v2066_v5  ;;  %v492_v5 = vld [vmem:[%s2534_s1] sm:$0x1] }
  0x6d   : > { %1872 = vmatprep.subr.bf16.mxu0 %v2068_v7  ;;  %1893 = vmatpush3.bf16.msra.mxu1 %v2067_v6  ;;  %v2271_v6 = vmov 1983009808  }
  0x6e   : > { %1894 = vmatprep.subr.bf16.mxu1 %v2069_v8  ;;  %v971_v7 = vunpack.c.l.s4 %v2271_v6  ;;  %v493_v8 = vld [vmem:[%s2534_s1 + $0x1] sm:$0x1] }
  0x70   : > { %1873 = vmatpush3.bf16.msra.mxu0 %v2070_v9  ;;  %v494_v9 = vld [vmem:[%s2534_s1 + $0x2] sm:$0x1] }
  0x71   : > { %1874 = vmatprep.subr.bf16.mxu0 %v2072_v11  ;;  %1895 = vmatpush3.bf16.msra.mxu1 %v2071_v10  ;;  %v495_v10 = vld [vmem:[%s2534_s1 + $0x3] sm:$0x1]  ;;  %v496_v11 = vunpack.c.l.bf16 %v492_v5 }
  0x72   : > { %1896 = vmatprep.subr.bf16.mxu1 %v2073_v12  ;;  %v497_v12 = vunpack.c.l.bf16 %v493_v8 }
  0x74   : > { %1875 = vmatpush3.bf16.msra.mxu0 %v2074_v13  ;;  %v498_v13 = vunpack.c.l.bf16 %v494_v9 }
  0x75   : > { %1876 = vmatprep.subr.bf16.mxu0 %v2076_v15  ;;  %1897 = vmatpush3.bf16.msra.mxu1 %v2075_v14  ;;  %v499_v14 = vunpack.c.l.bf16 %v495_v10  ;;  %v972_v15 = vunpack.c.0.s8 %v971_v7 }
  0x76   : > { %1898 = vmatprep.subr.bf16.mxu1 %v2077_v16  ;;  %v968_v16 = vcombine.low %v496_v11, %v497_v12 }
  0x78   : > { %1877 = vmatpush3.bf16.msra.mxu0 %v2078_v17  ;;  %v969_v17 = vcombine.low %v498_v13, %v499_v14 }
  0x79   : > { %1878 = vmatprep.subr.bf16.mxu0 %v2080_v19  ;;  %1899 = vmatpush3.bf16.msra.mxu1 %v2079_v18  ;;  %v975_v18 = vsub.s32 %v972_v15, %v2416_v32 }
  0x7a   : > { %1900 = vmatprep.subr.bf16.mxu1 %v2081_v20 }
  0x7b   : > { %v976_v19 = vrot.slane %v968_v16, %v975_v18  ;;  %v983_v20 = vrot.slane %v969_v17, %v975_v18 }
  0x7c   : > { %1879 = vmatpush3.bf16.msra.mxu0 %v2082_v22 }
  0x7d   : > { %1901 = vmatpush3.bf16.msra.mxu1 %v2083_v23  ;;  %1362 = vmatprep.subr.bf16.mxu0 %v2086_v27  ;;  %v984_v21 = vcombine.low %v976_v19, %v983_v20 }
  0x7e   : > { %1403 = vmatprep.subr.bf16.mxu1 %v2089_v29 }
  0x7f   : > { %1099 = vmatmul.mubr.bf16.vlgmr.msra.gmra.mxu0 %v553_v24 }
  0x80   : > { %1139 = vmatmul.mubr.bf16.vlgmr.msra.gmra.mxu1 %v569_v25  ;;  %1363 = vmatpush1.bf16.msra.mxu0 %v2084_v26 }
  0x81   : > { %1404 = vmatpush1.bf16.msra.mxu1 %v2087_v28  ;;  %1364 = vmatprep.subr.bf16.mxu0 %v2092_v30 }
  0x82   : > { %1405 = vmatprep.subr.bf16.mxu1 %v2095_v31  ;;  %1394 = vmatprep.mubr.bf16.mxu0 %v2270_v60 }
  0x83   : > { %1435 = vmatprep.mubr.bf16.mxu1 %v2270_v60 }
  0x84   : > { %1365 = vmatpush1.bf16.msra.mxu0 %v2090_v33 }
  0x85   : > { %1406 = vmatpush1.bf16.msra.mxu1 %v2093_v34  ;;  %1366 = vmatprep.subr.bf16.mxu0 %v2098_v35 }
  0x86   : > { %1407 = vmatprep.subr.bf16.mxu1 %v2101_v36 }
  0x88   : > { %1367 = vmatpush1.bf16.msra.mxu0 %v2096_v38 }
  0x89   : > { %1408 = vmatpush1.bf16.msra.mxu1 %v2099_v39  ;;  %1368 = vmatprep.subr.bf16.mxu0 %v2104_v40 }
  0x8a   : > { %1409 = vmatprep.subr.bf16.mxu1 %v2107_v41 }
  0x8c   : > { %1369 = vmatpush1.bf16.msra.mxu0 %v2102_v42  ;;  %v1184_v42 = vsub.s32 0, %v2416_v32 }
  0x8d   : > { %1410 = vmatpush1.bf16.msra.mxu1 %v2105_v43  ;;  %1370 = vmatprep.subr.bf16.mxu0 %v2110_v44  ;;  %v1192_v43 = vsub.s32 2, %v2416_v32  ;;  %v1188_v44 = vsub.s32 1, %v2416_v32 }
  0x8e   : > { %1411 = vmatprep.subr.bf16.mxu1 %v2113_v45  ;;  %v1196_v45 = vsub.s32 3, %v2416_v32 }
  0x90   : > { %1371 = vmatpush1.bf16.msra.mxu0 %v2108_v46  ;;  %v1180_v46 = vld [vmem:[%s352_s25] sm:$0xf] }
  0x91   : > { %1412 = vmatpush1.bf16.msra.mxu1 %v2111_v47  ;;  %1372 = vmatprep.subr.bf16.mxu0 %v2116_v48  ;;  %v1185_v47 = vrot.slane %v1180_v46, %v1184_v42  ;;  %v1193_v48 = vrot.slane %v1180_v46, %v1192_v43 }
  0x92   : > { %1413 = vmatprep.subr.bf16.mxu1 %v2119_v49  ;;  %v1189_v49 = vrot.slane %v1180_v46, %v1188_v44 }
  0x94   : > { %1373 = vmatpush1.bf16.msra.mxu0 %v2114_v50  ;;  %v1197_v50 = vrot.slane %v1180_v46, %v1196_v45 }
  0x95   : > { %1414 = vmatpush1.bf16.msra.mxu1 %v2117_v51  ;;  %1374 = vmatprep.subr.bf16.mxu0 %v2122_v52 }
  0x96   : > { %1415 = vmatprep.subr.bf16.mxu1 %v2125_v53 }
  0x98   : > { %1375 = vmatpush1.bf16.msra.mxu0 %v2120_v54 }
  0x99   : > { %1416 = vmatpush1.bf16.msra.mxu1 %v2123_v55  ;;  %1376 = vmatprep.subr.bf16.mxu0 %v2128_v56 }
  0x9a   : > { %1417 = vmatprep.subr.bf16.mxu1 %v2131_v57 }
  0x9c   : > { %1377 = vmatpush1.bf16.msra.mxu0 %v2126_v58 }
  0x9d   : > { %1418 = vmatpush1.bf16.msra.mxu1 %v2129_v59 }
 0x11f   : > { %v1836_v61 = vpop.f32.mrf.mxu0 }
 0x120   : > { %v1858_v62 = vpop.f32.mrf.mxu1 }
 0x121   : > { %v1837_v63 = vpop.f32.mrf.mxu0 }
 0x122   : > { %v1859_v0 = vpop.f32.mrf.mxu1  ;;  %v1838_v22 = vadd.f32 %v1837_v63, %v1836_v61 }
 0x123   : > { %v1839_v1 = vpop.f32.mrf.mxu0  ;;  %v1860_v24 = vadd.f32 %v1859_v0, %v1858_v62 }
 0x124   : > { %v1861_v2 = vpop.f32.mrf.mxu1  ;;  %v1021_v23 = vadd.f32 %v1838_v22, %v984_v21 }
 0x125   : > { %v1840_v3 = vpop.f32.mrf.mxu0 }
 0x126   : > { %v1862_v4 = vpop.f32.mrf.mxu1  ;;  %v1061_v28 = vadd.f32 %v1860_v24, %v1021_v23 }
 0x13f   : > { %v1880_v25 = vpop.f32.mrf.mxu0 }
 0x140   : > { %v1902_v26 = vpop.f32.mrf.mxu1 }
 0x141   : > { %v1881_v27 = vpop.f32.mrf.mxu0 }
 0x142   : > { %v1882_v29 = vadd.f32 %v1881_v27, %v1880_v25  ;;  %v1903_v30 = vpop.f32.mrf.mxu1 }
 0x143   : > { %v1883_v31 = vpop.f32.mrf.mxu0  ;;  %v1904_v34 = vadd.f32 %v1903_v30, %v1902_v26 }
 0x144   : > { %v1101_v33 = vadd.f32 %v1882_v29, %v1061_v28  ;;  %v1905_v35 = vpop.f32.mrf.mxu1 }
 0x145   : > { %v1884_v36 = vpop.f32.mrf.mxu0 }
 0x146   : > { %v1141_v38 = vadd.f32 %v1904_v34, %v1101_v33  ;;  %v1906_v39 = vpop.f32.mrf.mxu1 }
 0x148   : > { %v1146_v40 = vmax.f32 %v1141_v38, 0.0 }
 0x14a   : > { %v1147_v41 = vpack.c.bf16 %v1146_v40, %v1146_v40 }
 0x14c   : > { %1395 = vmatmul.mubr.bf16.vlgmr.msra.gmra.mxu0 %v1147_v41  ;;  %1436 = vmatmul.mubr.bf16.vlgmr.msra.gmra.mxu1 %v1147_v41 }
 0x20c   : > { %v1396_v51 = vpop.f32.mrf.mxu0  ;;  %v1437_v52 = vpop.f32.mrf.mxu1 }
 0x20d   : > { %v1397_v55 = vadd.f32 %v1396_v51, %v1185_v47  ;;  %v1438_v56 = vadd.f32 %v1437_v52, %v1193_v48 }
 0x20e   : > { %v1398_v53 = vpop.f32.mrf.mxu0  ;;  %v1439_v54 = vpop.f32.mrf.mxu1 }
 0x20f   : > { %v1399_v57 = vadd.f32 %v1398_v53, %v1189_v49  ;;  %v1440_v58 = vadd.f32 %v1439_v54, %v1197_v50 }
 0x210   : > { %v1400_v59 = vpop.f32.mrf.mxu0  ;;  %v1441_v60 = vpop.f32.mrf.mxu1 }
 0x211   : > { %v1809_v61 = vpack.c.bf16 %v1399_v57, %v1397_v55  ;;  %v1810_v62 = vpack.c.bf16 %v1440_v58, %v1438_v56 }
 0x212   : > { %v1401_v32 = vpop.f32.mrf.mxu0  ;;  %v1442_v63 = vpop.f32.mrf.mxu1 }
 0x213   : > { %v1460_v0 = vrot.slane %v1809_v61, %v2419_v37  ;;  %v1467_v1 = vrot.slane %v1810_v62, %v2419_v37  ;;  %1500 = sbr.rel (!%p2557_p9) target bundleno = 544 (0x220), region = 52 }
 0x215   : > { %v1468_v2 = vcombine.low %v1460_v0, %v1467_v1 }
 0x217   : > { %1811 = vst.sshfl [vmem:[%s326_s26] sm:$0x55 pattern:$0x73625140] %v1468_v2 }
 0x218 LB: >> { %s1522_s30 = sadd.s32 1, %s2260_s30   ;;  %s2260_s30 = sphi %s2258_s30, %s1522_s30  }
 0x219   : >> { %p1521_p11 = scmp.ge.s32.totalorder %s1522_s30, 1 }
 0x21b   : > { %1524 = sbr.rel (!%p1521_p11) target bundleno = 536 (0x218), region = 128 }
 0x21e   : >> { %v1528_v3 = vld [vmem:[%s326_s26] sm:$0xf] }
 0x21f   : >> { %1529 = vst [vmem:[%s1509_s6] sm:$0xf] %v1528_v3 }
 0x220 PF: > { %s2559_s16 = sld [smem:[#allocation9_spill]]  ;;  %s2560_s18 = smov %s2240_s19 }
 0x221   : > { %s2561_s19 = smov %s2244_s20  ;;  %s2562_s20 = smov %s2393_s5 }
 0x222   : > { %s2563_s21 = smov %s2252_s22  ;;  %s2564_s22 = smov %s2566_s8 }
 0x226   : > { %s19_s23 = sadd.s32 1, %s2559_s16  }
 0x227   : > { %p16_p3 = scmp.ge.s32.totalorder %s19_s23, 4  }
 0x229   :  { %18 = sbr.rel (!%p16_p3) target bundleno = 7 (0x7), region = 139 }
 0x22e   :  { %1572 = vsyncpa [#allocation3], 1 }
 0x22f   :  { %1574 = vsyncpa [#allocation3 + $0x1], 1 }
 0x230   :  { %1575 = vsyncpa [#allocation5], 1 }
 0x231   :  { %1577 = vsyncpa [#allocation5 + $0x1], 1 }

</bundles_post_ra>
